<compile_context>
chip_gen: v6e
topology: v6e:2x2x1
jax: 0.10.0
libtpu: 0.0.40
codegen_flags: <defaults>
</compile_context>

<pallas_src>
from typing import Sequence

import jax
import jax.numpy as jnp
import numpy as np
from jax.experimental import pallas as pl
from jax.experimental.pallas import tpu as pltpu

_MIB = 1024 * 1024


def _round_up(x: int, m: int) -> int:
    return ((x + m - 1) // m) * m


def _vmem_budget_and_limit() -> tuple[int, int]:
    """Generation-aware VMEM sizing: ~75% of per-core capacity."""
    try:
        cap = int(pltpu.get_tpu_info().vmem_capacity_bytes)
    except Exception:
        cap = 64 * _MIB                      # v7x-safe fallback
    limit = min(max(int(cap * 0.75), 32 * _MIB), 100 * _MIB)
    budget = limit - 2 * _MIB                # headroom for Mosaic internals
    return budget, limit


def _choose_row_tile(rows: int, bytes_per_row: int, sublane: int,
                     budget: int) -> int:
    """Largest sublane-multiple row tile whose working set fits the budget."""
    if rows <= sublane:
        return rows                          # block == full dim; always legal
    cap = max(sublane, (budget // max(bytes_per_row, 1)) // sublane * sublane)
    tile = min((rows // sublane) * sublane, cap)
    # A single-step grid leaves one TensorCore idle on 2-core chips (v7x);
    # split large problems in two (the extra ~0.35us step overhead is
    # negligible at this size).  Small problems keep one big block.
    if pl.cdiv(rows, tile) == 1 and rows >= 2048:
        tile = min(tile, _round_up(pl.cdiv(rows, 2), sublane))
    return tile


def _contiguous_runs(idx: np.ndarray) -> tuple:
    """Coalesce static indices into maximal contiguous (start, length) runs."""
    runs = []
    start = int(idx[0])
    length = 1
    for prev, cur in zip(idx[:-1], idx[1:]):
        if int(cur) == int(prev) + 1:
            length += 1
        else:
            runs.append((start, length))
            start = int(cur)
            length = 1
    runs.append((start, length))
    return tuple(runs)


def _make_gather_kernel(runs):
    # x_ref: (row_tile, T) slab of flattened leading dims x time
    # o_ref: (row_tile, K) gathered output (lane-dense, no padding)
    def kernel(x_ref, o_ref):
        x = x_ref[...]
        pieces = [x[:, s:s + n] for s, n in runs]
        o_ref[...] = pieces[0] if len(pieces) == 1 else jnp.concatenate(
            pieces, axis=1)
    return kernel


def _gather_last_axis(x2d: jax.Array, idx: np.ndarray) -> jax.Array:
    rows, T = x2d.shape
    K = int(idx.size)
    itemsize = jnp.dtype(x2d.dtype).itemsize
    sublane = max(8, 32 // itemsize)         # packed dtypes need more sublanes
    budget, vmem_limit = _vmem_budget_and_limit()
    bytes_per_row = 2 * (T + K) * itemsize   # double-buffered in + out blocks
    row_tile = _choose_row_tile(rows, bytes_per_row, sublane, budget)
    grid = (pl.cdiv(rows, row_tile),)        # partial last block masked by Pallas

    return pl.pallas_call(
        _make_gather_kernel(_contiguous_runs(idx)),
        out_shape=jax.ShapeDtypeStruct((rows, K), x2d.dtype),
        grid_spec=pltpu.PrefetchScalarGridSpec(
            num_scalar_prefetch=0,
            grid=grid,
            in_specs=[pl.BlockSpec((row_tile, T), lambda i: (i, 0))],
            out_specs=pl.BlockSpec((row_tile, K), lambda i: (i, 0)),
        ),
        compiler_params=pltpu.CompilerParams(
            dimension_semantics=("parallel",),
            vmem_limit_bytes=vmem_limit,
        ),
    )(x2d)


def time_subsample(x: jax.Array, time_indices: Sequence[int]) -> jax.Array:
    """Pallas TPU equivalent of TimeSubsampleTransform(time_indices)(x)."""
    *lead, T = x.shape
    idx = np.asarray(time_indices, dtype=np.int64).reshape(-1)
    idx = np.where(idx < 0, idx + T, idx)    # PyTorch-style negative indices
    if idx.size == 0 or np.any((idx < 0) | (idx >= T)):
        raise IndexError("time_indices out of range for time axis of size "
                         f"{T}: {time_indices}")
    K = int(idx.size)
    rows = int(np.prod(lead)) if lead else 1
    x2d = x.reshape(rows, T)
    out2d = _gather_last_axis(x2d, idx)
    return out2d.reshape(*lead, K)


if __name__ == "__main__":
    key = jax.random.PRNGKey(0)
    k1, k2, k3, k4, k5 = jax.random.split(key, 5)

    time_indices = [0, 3, 5, 6, 9, 12, 14, 15]
    idx_arr = jnp.asarray(time_indices)
    K = len(time_indices)

    # Case 1: float32, (batch, channels, time) as the PyTorch module expects.
    B, C, T = 2, 4, 16
    x1 = jax.random.normal(k1, (B, C, T), dtype=jnp.float32)
    out1 = jax.block_until_ready(time_subsample(x1, time_indices))
    assert out1.shape == (B, C, K) and out1.dtype == x1.dtype
    np.testing.assert_array_equal(np.asarray(out1), np.asarray(x1[..., idx_arr]))

    # Case 2: leading dims that do not divide the row tile (partial last block,
    # no wrapper-side padding).
    x2 = jax.random.normal(k2, (3, 5, T), dtype=jnp.float32)
    out2 = jax.block_until_ready(time_subsample(x2, time_indices))
    np.testing.assert_array_equal(np.asarray(out2), np.asarray(x2[..., idx_arr]))

    # Case 3: integer input (bit-exact copy gather).
    x3 = jax.random.randint(k3, (2, 3, T), minval=-(2 ** 30), maxval=2 ** 30,
                            dtype=jnp.int32)
    out3 = jax.block_until_ready(time_subsample(x3, time_indices))
    assert out3.dtype == jnp.int32
    np.testing.assert_array_equal(np.asarray(out3), np.asarray(x3[..., idx_arr]))

    # Case 4: bfloat16 (exercises the 16-sublane packing path).
    x4 = jax.random.normal(k4, (4, 8, T), dtype=jnp.bfloat16)
    out4 = jax.block_until_ready(time_subsample(x4, time_indices))
    np.testing.assert_array_equal(
        np.asarray(out4.astype(jnp.float32)),
        np.asarray(x4[..., idx_arr].astype(jnp.float32)))

    # Case 5: 1-D input (empty leading dims) and negative indices.
    x5 = jax.random.normal(k5, (T,), dtype=jnp.float32)
    out5 = jax.block_until_ready(time_subsample(x5, [0, -1, 7]))
    np.testing.assert_array_equal(
        np.asarray(out5), np.asarray(x5[jnp.asarray([0, T - 1, 7])]))

    print("KERNEL_OK")
</pallas_src>

<mosaic_0001>
module attributes {stable_mosaic.version = 11 : i64} {
  func.func @kernel(%arg0: i32, %arg1: memref<8x16xf32, #tpu.memory_space<vmem>>, %arg2: memref<8x8xf32, #tpu.memory_space<vmem>>) attributes {dimension_semantics = [#tpu.dimension_semantics<parallel>], iteration_bounds = array<i64: 1>, scalar_prefetch = 0 : i64, scratch_operands = 0 : i64, tpu.core_type = #tpu.core_type<tc>, window_params = [{transform_indices = @transform_0, window_bounds = array<i64: 8, 16>}, {transform_indices = @transform_1, window_bounds = array<i64: 8, 8>}]} {
    %c0 = arith.constant 0 : index
    %c0_0 = arith.constant 0 : index
    %0 = vector.load %arg1[%c0, %c0_0] : memref<8x16xf32, #tpu.memory_space<vmem>>, vector<8x16xf32>
    %1 = vector.extract_strided_slice %0 {offsets = [0, 0], sizes = [8, 1], strides = [1, 1]} : vector<8x16xf32> to vector<8x1xf32>
    %2 = vector.extract_strided_slice %0 {offsets = [0, 3], sizes = [8, 1], strides = [1, 1]} : vector<8x16xf32> to vector<8x1xf32>
    %3 = vector.extract_strided_slice %0 {offsets = [0, 5], sizes = [8, 2], strides = [1, 1]} : vector<8x16xf32> to vector<8x2xf32>
    %4 = vector.extract_strided_slice %0 {offsets = [0, 9], sizes = [8, 1], strides = [1, 1]} : vector<8x16xf32> to vector<8x1xf32>
    %5 = vector.extract_strided_slice %0 {offsets = [0, 12], sizes = [8, 1], strides = [1, 1]} : vector<8x16xf32> to vector<8x1xf32>
    %6 = vector.extract_strided_slice %0 {offsets = [0, 14], sizes = [8, 2], strides = [1, 1]} : vector<8x16xf32> to vector<8x2xf32>
    %7 = tpu.concatenate %1, %2, %3, %4, %5, %6 in 1 : vector<8x1xf32>, vector<8x1xf32>, vector<8x2xf32>, vector<8x1xf32>, vector<8x1xf32>, vector<8x2xf32> -> vector<8x8xf32>
    %c0_1 = arith.constant 0 : index
    %c0_2 = arith.constant 0 : index
    %8 = vector.load %arg2[%c0_1, %c0_2] : memref<8x8xf32, #tpu.memory_space<vmem>>, vector<8x8xf32>
    tpu.vector_store %arg2[%c0_1, %c0_2], %7 {strides = array<i32>} : memref<8x8xf32, #tpu.memory_space<vmem>>, vector<8x8xf32>,
    return
  }
  func.func @transform_0(%arg0: i32) -> (i32, i32) {
    %c0_i32 = arith.constant 0 : i32
    %c0_i32_0 = arith.constant 0 : i32
    return %arg0, %c0_i32 : i32, i32
  }
  func.func @transform_1(%arg0: i32) -> (i32, i32) {
    %c0_i32 = arith.constant 0 : i32
    %c0_i32_0 = arith.constant 0 : i32
    return %arg0, %c0_i32 : i32, i32
  }
}

</mosaic_0001>

<bundles_post_ra>
// kernel: tpu_custom_call.1
= control target key start
LH: loop header
LB: loop body
LE: loop exit
PB: predicated region body
PF: predicated region fallthrough
CT: control target
= control target key end

     0   :  { %6 = vsyncpa [#allocation3], 0  ;;  %s139_s0 = inlined_call_operand.hbm [shape: f32[8,16], index: 0, kind: input, shape index: {}]   ;;  %s140_s1 = inlined_call_operand.hbm [shape: f32[8,8], index: 1, kind: output, shape index: {}]  }
   0x1   :  { %7 = vsyncpa [#allocation4], 0  ;;  %s116_s6 = smov [#allocation2]  }
   0x2   :  { %s14_s7 = sshll.u32 %s116_s6, 4  ;;  %s15_s7 = int_to_ptr.vmem [resolvable:$true] %s14_s7 }
   0x3   :  { %s80_s8 = scalar_lea.vmem %s15_s7, 128  ;;  %p85_p1 = scmp.lt.s32.totalorder %s15_s7, %s15_s7 }
   0x4   :  { %p81_p0 = scmp.ne.s32.totalorder %s15_s7, %s80_s8  ;;  %p86_p2 = scmp.lt.s32.totalorder %s80_s8, %s80_s8 }
   0x6   :  { %p87_p3 = por %p86_p2, %p85_p1 }
   0x8   :  { %p88_p4 = pnand %p87_p3, %p81_p0 }
   0xa   :  { %91 = shalt.err (!%p88_p4)
}
   0xb   :  { %17 = dma.hbm_to_vmem [thread:$0]  %s139_s0, 128, %s15_s7, [#allocation3]  }
   0xc   :  { %112 = dma.done.wait [#allocation3], 128  }
   0xd   :  { %113 = vsyncadd [#allocation3], 4294967168  ;;  %v21_v0 = vld [vmem:[#allocation2] sm:$0xff]  ;;  %s117_s11 = smov 126   ;;  %s118_s12 = smov 123   ;;  %vm38_vm0 = vcmask 7168  }
   0xe   :  { %23 = vrot.lane.b32.xlu0 %v21_v0, %s117_s11  ;;  %29 = vrot.lane.b32.xlu1 %v21_v0, %s118_s12  ;;  %s119_s13 = smov 125   ;;  %s120_s14 = smov 121   ;;  %vm40_vm1 = vcmask 15360   ;;  %vm42_vm2 = vcmask 31744   ;;  %vm44_vm3 = vcmask 39936   ;;  %vm46_vm4 = vcmask 48128  }
   0xf   :  { %s121_s15 = smov 120   ;;  %s122_s0 = smov [#allocation5]   ;;  %vm48_vm5 = vcmask 64512  }
  0x10   :  { %s56_s16 = sshll.u32 %s122_s0, 4  ;;  %s57_s16 = int_to_ptr.vmem [resolvable:$true] %s56_s16 }
  0x11   :  { %s92_s17 = scalar_lea.vmem %s57_s16, 128  ;;  %p97_p6 = scmp.lt.s32.totalorder %s57_s16, %s57_s16 }
  0x12   :  { %26 = vrot.lane.b32.xlu0 %v21_v0, %s119_s13  ;;  %32 = vrot.lane.b32.xlu1 %v21_v0, %s120_s14  ;;  %p93_p5 = scmp.ne.s32.totalorder %s57_s16, %s92_s17  ;;  %p98_p7 = scmp.lt.s32.totalorder %s92_s17, %s92_s17 }
  0x14   :  { %p99_p8 = por %p98_p7, %p97_p6 }
  0x16   :  { %35 = vrot.lane.b32.xlu0 %v21_v0, %s121_s15  ;;  %p100_p9 = pnand %p99_p8, %p93_p5 }
  0x80   :  { %v24_v1 = vpop.permute.xlu0 %23  ;;  %v30_v2 = vpop.permute.xlu1 %29 }
  0x81   :  { %v39_v3 = vsel %vm38_vm0, %v21_v0, %v24_v1 }
  0x84   :  { %v27_v4 = vpop.permute.xlu0 %26  ;;  %v33_v5 = vpop.permute.xlu1 %32 }
  0x85   :  { %v41_v6 = vsel %vm40_vm1, %v39_v3, %v27_v4 }
  0x86   :  { %v43_v7 = vsel %vm42_vm2, %v41_v6, %v30_v2 }
  0x87   :  { %v45_v8 = vsel %vm44_vm3, %v43_v7, %v33_v5 }
  0x88   :  { %v36_v9 = vpop.permute.xlu0 %35 }
  0x89   :  { %v47_v10 = vsel %vm46_vm4, %v45_v8, %v36_v9 }
  0x8a   :  { %49 = vst.msk [vmem:[#allocation5] sm:$0xff] %vm48_vm5, %v47_v10 }
  0x8b   :  { %103 = shalt.err (!%p100_p9)
}
  0x8c   :  { %59 = dma.vmem_to_hbm [thread:$0]  %s57_s16, 128, %s140_s1, [#allocation4]  }
  0x8d   :  { %114 = dma.done.wait [#allocation4], 128  }
  0x8e   :  { %115 = vsyncadd [#allocation4], 4294967168 }
  0x8f   :  { %63 = vsyncpa [#allocation3], 1 }
  0x90   :  { %64 = vsyncpa [#allocation4], 1 }

</bundles_post_ra>
